<compile_context>
chip_gen: v6e
topology: v6e:2x2x1
jax: 0.10.0
libtpu: 0.0.40
codegen_flags: <defaults>
</compile_context>

<pallas_src>
import math
import functools

import jax
import jax.numpy as jnp
from jax.experimental import pallas as pl
from jax.experimental.pallas import tpu as pltpu


# ------------------------------ small helpers --------------------------------
def _cdiv(a, b):
    return -(-a // b)


def _round_up(a, m):
    return _cdiv(a, m) * m


@functools.lru_cache(maxsize=1)
def _hw_budget():
    """Return (target emb-tile bytes, scoped vmem limit), generation-aware.

    Buffers live as: 2x emb-in + 2x out + 2x pe  ~= 6 * tile_bytes, so a
    3-4 MiB tile keeps us comfortably under the limit on every generation.
    """
    cap = 0
    try:
        info = pltpu.get_tpu_info()
        cap = int(getattr(info, "vmem_capacity_bytes", 0) or 0)
    except Exception:
        cap = 0
    if cap <= 0:
        cap = 64 << 20                       # conservative: v7x per-TC VMEM
    if cap >= (96 << 20):                    # v5e / v6e: 128 MiB physical
        return (4 << 20), (48 << 20)
    return (3 << 20), (32 << 20)             # v7x: 64 MiB physical per core


def _pick_tile(total, align, max_tile_elems, min_steps):
    """Tile size (elements) along one axis.

    Multiple of `align`, near max_tile_elems, small enough that the grid has
    >= min_steps steps when the extent permits, and never larger than the
    array extent (ragged last block handled by Pallas masking)."""
    if total <= align:
        return total                         # single block == full (small) dim
    tile = max(align, (max_tile_elems // align) * align)
    if min_steps > 1:
        tile = min(tile, max(align, _round_up(_cdiv(total, min_steps), align)))
    return min(tile, (total // align) * align)


# ------------------------------ Pallas kernels --------------------------------
def _scale_add_kernel(emb_ref, pe_ref, out_ref, *, scale):
    # Elementwise body; pe_ref broadcasts against emb_ref:
    #   flat path : emb (B, tF)    + pe (1, tF)
    #   3-D path  : emb (1, tS, D) + pe (tS, D)
    out_ref[...] = (emb_ref[...] * scale + pe_ref[...]).astype(out_ref.dtype)
    # TODO(synk): training-mode nn.Dropout would need pltpu.prng_seed + an
    # in-kernel stochastic mask; this forward matches eval mode (identity).


def _scale_add_step_kernel(step_ref, emb_ref, pe_ref, out_ref, *, scale):
    # step_ref (SMEM) already consumed by the pe index_map; pe_ref is (1, 1, D).
    del step_ref
    out_ref[...] = (emb_ref[...] * scale + pe_ref[0]).astype(out_ref.dtype)


# --------------------------------- forward ------------------------------------
def positional_encoding_forward(emb, pe, dim, step=None):
    """Fused `emb * sqrt(dim) + pe[...]` (eval-mode PositionalEncoding.forward).

    emb: (B, S, D); pe: (max_len, D); step: optional decode position (Python
    int or traced/device int32 scalar — one compiled kernel serves all steps).
    """
    B, S, D = emb.shape
    assert D == dim, (D, dim)
    max_len, pe_d = pe.shape
    assert pe_d == D, (pe.shape, D)

    scale = math.sqrt(dim)
    itemsize = jnp.dtype(emb.dtype).itemsize
    target_tile_bytes, vmem_limit = _hw_budget()

    def _cost(pe_rows):
        return pl.CostEstimate(
            flops=2 * B * S * D,
            transcendentals=0,
            bytes_accessed=(2 * B * S * D + pe_rows * D) * itemsize)

    # ----------------------------- decode step -------------------------------
    if step is not None:
        if isinstance(step, int):
            assert 0 <= step < max_len, (step, max_len)
        kernel = functools.partial(_scale_add_step_kernel, scale=scale)

        R = B * S
        emb_rows = emb.reshape(R, D)                     # fold batch into rows
        row_bytes = _round_up(D, 128) * itemsize         # physical (lane-padded)
        tR = _pick_tile(R, 8, max(8, target_tile_bytes // row_bytes), min_steps=2)

        step_arr = jnp.asarray(step, dtype=jnp.int32).reshape((1,))
        pe_r = pe.reshape(max_len, 1, D)                 # free view; (1,1,D) blocks

        out = pl.pallas_call(
            kernel,
            out_shape=jax.ShapeDtypeStruct((R, D), emb.dtype),
            grid_spec=pltpu.PrefetchScalarGridSpec(
                num_scalar_prefetch=1,                   # step lives in SMEM
                grid=(_cdiv(R, tR),),
                in_specs=[
                    pl.BlockSpec((tR, D), lambda r, s: (r, 0)),
                    pl.BlockSpec((1, 1, D), lambda r, s: (s[0], 0, 0)),
                ],
                out_specs=pl.BlockSpec((tR, D), lambda r, s: (r, 0)),
            ),
            compiler_params=pltpu.CompilerParams(
                dimension_semantics=("parallel",),
                vmem_limit_bytes=vmem_limit),
            cost_estimate=_cost(pe_rows=1),
        )(step_arr, emb_rows, pe_r)
        return out.reshape(B, S, D)

    # ----------------------------- sequence mode -----------------------------
    assert S <= max_len, (S, max_len)
    kernel = functools.partial(_scale_add_kernel, scale=scale)

    if D % 128 == 0:
        # Lane- and sublane-dense 3-D path; pe tile depends only on the seq
        # block, so it stays VMEM-resident across the innermost batch axis.
        rows_target = max(8, target_tile_bytes // (D * itemsize))
        min_s_blocks = max(1, _cdiv(8, B))               # >= ~8 total grid steps
        tS = _pick_tile(S, 8, rows_target, min_steps=min_s_blocks)
        nS = _cdiv(S, tS)
        return pl.pallas_call(
            kernel,
            out_shape=jax.ShapeDtypeStruct((B, S, D), emb.dtype),
            grid_spec=pltpu.PrefetchScalarGridSpec(
                num_scalar_prefetch=0,
                grid=(nS, B),                            # batch innermost
                in_specs=[
                    pl.BlockSpec((1, tS, D), lambda s, b: (b, s, 0)),
                    pl.BlockSpec((tS, D), lambda s, b: (s, 0)),
                ],
                out_specs=pl.BlockSpec((1, tS, D), lambda s, b: (b, s, 0)),
            ),
            compiler_params=pltpu.CompilerParams(
                dimension_semantics=("parallel", "parallel"),
                vmem_limit_bytes=vmem_limit),
            cost_estimate=_cost(pe_rows=S),
        )(emb, pe)

    # Flat lane-dense path (D not a multiple of 128): view (B, S, D) as
    # (B, S*D) so stores are full-128-lane writes; ragged last block is masked
    # by Pallas, so (S*D) % 128 is not required.  pe is viewed flat over the
    # full buffer (emb flat offset == pe flat offset for the first S rows).
    F = S * D
    emb_flat = emb.reshape(B, F)                         # free contiguous view
    pe_flat = pe.reshape(1, max_len * D)                 # free contiguous view
    phys_rows = _round_up(B, 8)                          # sublane padding if B<8
    lanes_target = max(128, target_tile_bytes // (phys_rows * itemsize))
    tF = _pick_tile(F, 128, lanes_target, min_steps=8)
    out = pl.pallas_call(
        kernel,
        out_shape=jax.ShapeDtypeStruct((B, F), emb.dtype),
        grid_spec=pltpu.PrefetchScalarGridSpec(
            num_scalar_prefetch=0,
            grid=(_cdiv(F, tF),),
            in_specs=[
                pl.BlockSpec((B, tF), lambda f: (0, f)),
                pl.BlockSpec((1, tF), lambda f: (0, f)),
            ],
            out_specs=pl.BlockSpec((B, tF), lambda f: (0, f)),
        ),
        compiler_params=pltpu.CompilerParams(
            dimension_semantics=("parallel",),
            vmem_limit_bytes=vmem_limit),
        cost_estimate=_cost(pe_rows=S),
    )(emb_flat, pe_flat)
    return out.reshape(B, S, D)


# --------------------------- parameter construction --------------------------
def make_pe_buffer(max_len, dim):
    """Deterministic sinusoidal PE buffer, identical to the PyTorch __init__."""
    assert dim % 2 == 0, "PositionalEncoding requires an even dim"
    position = jnp.arange(0, max_len, dtype=jnp.float32)[:, None]             # (L, 1)
    div_term = jnp.exp(jnp.arange(0, dim, 2, dtype=jnp.float32)
                       * -(math.log(10000.0) / dim))                          # (D/2,)
    pe = jnp.zeros((max_len, dim), dtype=jnp.float32)
    pe = pe.at[:, 0::2].set(jnp.sin(position * div_term))
    pe = pe.at[:, 1::2].set(jnp.cos(position * div_term))
    return pe                                                                 # (L, D)


# ------------------------------------ main ------------------------------------
if __name__ == "__main__":
    batch, seq, dim = 2, 8, 32
    max_len = 64
    dropout_p = 0.1  # eval-mode forward: dropout is identity

    key = jax.random.PRNGKey(0)
    emb = jax.random.normal(key, (batch, seq, dim), dtype=jnp.float32)
    pe = make_pe_buffer(max_len, dim)

    # sequence mode, D % 128 != 0  ->  flat lane-dense path
    out = jax.block_until_ready(positional_encoding_forward(emb, pe, dim))
    ref = emb * math.sqrt(dim) + pe[:seq][None, :, :]
    assert jnp.allclose(out, ref, atol=1e-5, rtol=1e-5), "seq-mode mismatch"

    # decode step mode (scalar-prefetched step, row-tiled blocks)
    out_step = jax.block_until_ready(positional_encoding_forward(emb, pe, dim, step=3))
    ref_step = emb * math.sqrt(dim) + pe[3][None, None, :]
    assert jnp.allclose(out_step, ref_step, atol=1e-5, rtol=1e-5), "step-mode mismatch"

    # sequence mode, D % 128 == 0  ->  3-D lane/sublane-dense path
    dim2 = 128
    emb2 = jax.random.normal(jax.random.PRNGKey(1), (2, 16, dim2), dtype=jnp.float32)
    pe2 = make_pe_buffer(max_len, dim2)
    out2 = jax.block_until_ready(positional_encoding_forward(emb2, pe2, dim2))
    ref2 = emb2 * math.sqrt(dim2) + pe2[:16][None, :, :]
    assert jnp.allclose(out2, ref2, atol=1e-5, rtol=1e-5), "dense-path mismatch"

    # ragged flat edge: S*D = 144 (not a multiple of 128), masked edge block
    emb3 = jax.random.normal(jax.random.PRNGKey(2), (2, 6, 24), dtype=jnp.float32)
    pe3 = make_pe_buffer(max_len, 24)
    out3 = jax.block_until_ready(positional_encoding_forward(emb3, pe3, 24))
    ref3 = emb3 * math.sqrt(24) + pe3[:6][None, :, :]
    assert jnp.allclose(out3, ref3, atol=1e-5, rtol=1e-5), "ragged-edge mismatch"

    print("KERNEL_OK")
</pallas_src>

<mosaic_0001>
module attributes {stable_mosaic.version = 11 : i64} {
  func.func @_scale_add_kernel(%arg0: i32, %arg1: memref<2x128xf32, #tpu.memory_space<vmem>>, %arg2: memref<1x128xf32, #tpu.memory_space<vmem>>, %arg3: memref<2x128xf32, #tpu.memory_space<vmem>>) attributes {dimension_semantics = [#tpu.dimension_semantics<parallel>], iteration_bounds = array<i64: 2>, scalar_prefetch = 0 : i64, scratch_operands = 0 : i64, tpu.core_type = #tpu.core_type<tc>, window_params = [{transform_indices = @transform_0, window_bounds = array<i64: 2, 128>}, {transform_indices = @transform_1, window_bounds = array<i64: 1, 128>}, {transform_indices = @transform_2, window_bounds = array<i64: 2, 128>}]} {
    %c0 = arith.constant 0 : index
    %c0_0 = arith.constant 0 : index
    %0 = vector.load %arg1[%c0, %c0_0] : memref<2x128xf32, #tpu.memory_space<vmem>>, vector<2x128xf32>
    %cst = arith.constant 5.65685415 : f32
    %1 = vector.broadcast %cst : f32 to vector<2x128xf32>
    %2 = arith.mulf %0, %1 : vector<2x128xf32>
    %c0_1 = arith.constant 0 : index
    %c0_2 = arith.constant 0 : index
    %3 = vector.load %arg2[%c0_1, %c0_2] : memref<1x128xf32, #tpu.memory_space<vmem>>, vector<1x128xf32>
    %4 = vector.broadcast %3 : vector<1x128xf32> to vector<2x128xf32>
    %5 = arith.addf %2, %4 : vector<2x128xf32>
    %c0_3 = arith.constant 0 : index
    %c0_4 = arith.constant 0 : index
    %6 = vector.load %arg3[%c0_3, %c0_4] : memref<2x128xf32, #tpu.memory_space<vmem>>, vector<2x128xf32>
    tpu.vector_store %arg3[%c0_3, %c0_4], %5 {strides = array<i32>} : memref<2x128xf32, #tpu.memory_space<vmem>>, vector<2x128xf32>,
    return
  }
  func.func @transform_0(%arg0: i32) -> (i32, i32) {
    %c0_i32 = arith.constant 0 : i32
    %c0_i32_0 = arith.constant 0 : i32
    return %c0_i32, %arg0 : i32, i32
  }
  func.func @transform_1(%arg0: i32) -> (i32, i32) {
    %c0_i32 = arith.constant 0 : i32
    %c0_i32_0 = arith.constant 0 : i32
    return %c0_i32, %arg0 : i32, i32
  }
  func.func @transform_2(%arg0: i32) -> (i32, i32) {
    %c0_i32 = arith.constant 0 : i32
    %c0_i32_0 = arith.constant 0 : i32
    return %c0_i32, %arg0 : i32, i32
  }
}

</mosaic_0001>

<bundles_post_ra>
// kernel: tpu_custom_call.1
= control target key start
LH: loop header
LB: loop body
LE: loop exit
PB: predicated region body
PF: predicated region fallthrough
CT: control target
= control target key end

     0   :  { %7 = vsyncpa [#allocation3], 0  ;;  %s706_s0 = inlined_call_operand.hbm [shape: f32[2,256], index: 0, kind: input, shape index: {}]   ;;  %s707_s1 = inlined_call_operand.hbm [shape: f32[1,2048], index: 1, kind: input, shape index: {}]   ;;  %s708_s2 = inlined_call_operand.hbm [shape: f32[2,256], index: 2, kind: output, shape index: {}]  }
   0x1   :  { %9 = vsyncpa [#allocation3 + $0x1], 0 }
   0x2   :  { %10 = vsyncpa [#allocation6], 0 }
   0x3   :  { %12 = vsyncpa [#allocation6 + $0x1], 0 }
   0x4   :  { %13 = vsyncpa [#allocation4], 0 }
   0x5   :  { %15 = vsyncpa [#allocation4 + $0x1], 0  ;;  %s517_s9 = smov 0   ;;  %s519_s10 = smov 0  }
   0x6   :  { %s521_s11 = smov 0   ;;  %s523_s12 = smov 0  }
   0x7 LB: > { %s538_s13 = sadd.s32 4294967295, %s497_s12   ;;  %s308_s14 = sadd.s32 4294967294, %s497_s12   ;;  %s497_s12 = sphi %s523_s12, %s727_s12   ;;  %s493_s11 = sphi %s521_s11, %s726_s11   ;;  %s489_s10 = sphi %s519_s10, %s725_s10   ;;  %s485_s9 = sphi %s517_s9, %s724_s9  }
   0x8   : > { %s542_s15 = sadd.s32 1, %s497_s12   ;;  %s28_s16 = sadd.s32 1, %s493_s11 }
   0x9   : > { %s25_s17 = ssub.s32 %s497_s12, %s542_s15  ;;  %p35_p0 = scmp.ne.s32.totalorder %s493_s11, %s489_s10 }
   0xa   : > { %p26_p1 = scmp.eq.s32.totalorder %s25_s17, 0  ;;  %p36_p2 = scmp.eq.s32.totalorder %s497_s12, 0 }
   0xb   : > { %p41_p3 = scmp.ne.s32.totalorder %s489_s10, %s485_s9  ;;  %p42_p4 = scmp.eq.s32.totalorder %s538_s13, 0 }
   0xc   : > { %s554_s18 = scalar_select %p26_p1, %s493_s11, %s28_s16  }
   0xd   : > { %p556_p5 = por %p36_p2, %p35_p0  ;;  %p560_p6 = por %p42_p4, %p41_p3 }
   0xe   : > { %p91_p7 = scmp.eq.s32.totalorder %s538_s13, 1  ;;  %p97_p8 = scmp.eq.s32.totalorder %s308_s14, 1 }
   0xf   : > { %s712_s20 = scalar_select %p560_p6, 1, 0 }
  0x10   : > { %p339_p10 = scmp.lt.s32.totalorder %s497_s12, 2  ;;  %p567_p11 = por %p91_p7, %p35_p0 }
  0x11   : > { %p571_p12 = por %p97_p8, %p41_p3  ;;  %s576_s23 = sand.u32 1, %s493_s11  }
  0x12   : > { %s713_s21 = scalar_select %p567_p11, 1, 0 }
  0x13   : > { %s714_s22 = scalar_select %p571_p12, 1, 0 }
  0x14   : > { %s312_s24 = sshll.u32 %s497_s12, 5  ;;  %s311_s25 = sshll.u32 %s576_s23, 1 }
  0x15   : > { %s583_s28 = scalar_lea.hbm %s706_s0, %s312_s24  ;;  %s121_s29 = scalar_lea.vmem [#allocation2], %s311_s25 }
  0x16   : > { %s128_s30 = sshll.u32 %s121_s29, 4  ;;  %p587_p13 = pnand %p339_p10, %p556_p5  ;;  %s591_s30 = int_to_ptr.vmem [resolvable:$true] %s128_s30 }
  0x17   : > { %s118_s4 = scalar_lea.sflag [#allocation3], %s576_s23  ;;  %s373_s5 = scalar_lea.hbm %s583_s28, 32 }
  0x18   : > { %p374_p2 = scmp.ne.s32.totalorder %s583_s28, %s373_s5  ;;  %p375_p3 = pneg %p587_p13 }
  0x19   : > { %s378_s8 = scalar_lea.hbm %s706_s0, 64  ;;  %p379_p5 = scmp.lt.s32.totalorder %s583_s28, %s706_s0 }
  0x1a   : > { %p376_p4 = pnand %p375_p3, %p374_p2  ;;  %p380_p8 = scmp.lt.s32.totalorder %s378_s8, %s373_s5 }
  0x1c   : > { %p377_p7 = pneg %p376_p4  ;;  %p381_p10 = por %p380_p8, %p379_p5 }
  0x1e   : > { %p382_p9 = pnand %p381_p10, %p377_p7 }
  0x20   : > { %385 = shalt.err (!%p382_p9)
}
  0x21   : > { %s386_s17 = scalar_lea.vmem %s591_s30, 32  ;;  %s499_s19 = smov [#allocation2]  }
  0x22   : > { %p387_p0 = scmp.ne.s32.totalorder %s591_s30, %s386_s17  ;;  %s391_s24 = sshll.u32 %s499_s19, 4  ;;  %s392_s24 = int_to_ptr.vmem [resolvable:$false] %s391_s24 }
  0x23   : > { %s393_s25 = scalar_lea.vmem %s392_s24, 64  ;;  %p394_p1 = scmp.lt.s32.totalorder %s591_s30, %s392_s24 }
  0x24   : > { %p389_p2 = pnand %p387_p0, %p375_p3  ;;  %p395_p12 = scmp.lt.s32.totalorder %s393_s25, %s386_s17 }
  0x26   : > { %p390_p4 = pneg %p389_p2  ;;  %p396_p11 = por %p395_p12, %p394_p1 }
  0x28   : > { %p397_p5 = pnand %p396_p11, %p390_p4 }
  0x2a   : > { %400 = shalt.err (!%p397_p5)
}
  0x2b   : > { %331 = dma.hbm_to_vmem [thread:$0]  (!%p587_p13), %s583_s28, 32, %s591_s30, %s118_s4  }
  0x2c   : > { %p716_p9 = scmp.lt.s32.totalorder %s497_s12, 3  ;;  %p717_p0 = scmp.ge.s32.totalorder %s497_s12, 1 }
  0x2d   : > { %s313_s27 = sshll.u32 %s497_s12, 4  ;;  %s138_s7 = scalar_lea.vmem [#allocation5], %s576_s23 }
  0x2e   : > { %p624_p7 = pnand %p717_p0, %p716_p9  ;;  %s632_s6 = scalar_lea.hbm %s707_s1, %s313_s27 }
  0x2f   : > { %s145_s8 = sshll.u32 %s138_s7, 4  ;;  %s136_s14 = scalar_lea.sflag [#allocation6], %s576_s23  ;;  %s146_s8 = int_to_ptr.vmem [resolvable:$true] %s145_s8 }
  0x30   : > { %s718_s26 = scalar_select %p624_p7, 1, 0 }
  0x31   : > { %s401_s28 = scalar_lea.hbm %s632_s6, 16  ;;  %s406_s16 = scalar_lea.hbm %s707_s1, 256 }
  0x32   : > { %p402_p11 = scmp.ne.s32.totalorder %s632_s6, %s401_s28  ;;  %p407_p8 = scmp.lt.s32.totalorder %s632_s6, %s707_s1 }
  0x33   : > { %p408_p10 = scmp.lt.s32.totalorder %s406_s16, %s401_s28 }
  0x34   : > { %p404_p12 = pnand %p402_p11, %p375_p3 }
  0x35   : > { %p409_p2 = por %p408_p10, %p407_p8 }
  0x36   : > { %p405_p1 = pneg %p404_p12 }
  0x38   : > { %p410_p4 = pnand %p409_p2, %p405_p1 }
  0x3a   : > { %413 = shalt.err (!%p410_p4)
}
  0x3b   : > { %s414_s24 = scalar_lea.vmem %s146_s8, 16  ;;  %s500_s23 = smov [#allocation5]  }
  0x3c   : > { %p415_p5 = scmp.ne.s32.totalorder %s146_s8, %s414_s24  ;;  %s419_s25 = sshll.u32 %s500_s23, 4  ;;  %s420_s25 = int_to_ptr.vmem [resolvable:$false] %s419_s25 }
  0x3d   : > { %s421_s27 = scalar_lea.vmem %s420_s25, 32  ;;  %p422_p11 = scmp.lt.s32.totalorder %s146_s8, %s420_s25 }
  0x3e   : > { %p417_p9 = pnand %p415_p5, %p375_p3  ;;  %p423_p12 = scmp.lt.s32.totalorder %s421_s27, %s414_s24 }
  0x40   : > { %p418_p0 = pneg %p417_p9  ;;  %p424_p6 = por %p423_p12, %p422_p11 }
  0x42   : > { %p425_p7 = pnand %p424_p6, %p418_p0 }
  0x44   : > { %428 = shalt.err (!%p425_p7)
}
  0x45   : > { %334 = dma.hbm_to_vmem [thread:$0]  (!%p587_p13), %s632_s6, 16, %s146_s8, %s136_s14  }
  0x46   : > { %p719_p1 = scmp.ne.s32.totalorder %s718_s26, 0 }
  0x47   : > { %s657_s29 = sand.u32 (!%p719_p1), 1, %s489_s10   ;;  %p720_p3 = scmp.ne.s32.totalorder (!%p719_p1), %s712_s20, 0 }
  0x48   : > { %154 = sbr.rel (%p719_p1) target bundleno = 105 (0x69), region = 28  ;;  %s315_s5 = sshll.u32 (!%p719_p1), %s657_s29, 1 }
  0x49   : > { %s157_s7 = scalar_lea.sflag (!%p719_p1), [#allocation3], %s657_s29  ;;  %s160_s28 = scalar_lea.vmem (!%p719_p1), [#allocation2], %s315_s5 }
  0x4d   : > { %472 = dma.done.wait (%p720_p3), %s157_s7, 32  }
  0x4e   : > { %474 = vsyncadd (%p720_p3), %s157_s7, 4294967264  ;;  %s166_s3 = scalar_lea.sflag [#allocation6], %s657_s29  ;;  %s168_s26 = scalar_lea.vmem [#allocation5], %s657_s29 }
  0x4f   : > { %476 = dma.done.wait (%p720_p3), %s166_s3, 16  }
  0x50   : > { %478 = vsyncadd (%p720_p3), %s166_s3, 4294967280  ;;  %v193_v0 = vld [vmem:[%s160_s28] sm:$0x3]  ;;  %s192_s6 = scalar_lea.vmem [#allocation7], %s315_s5  ;;  %s319_s14 = sshll.u32 %s538_s13, 5 }
  0x51   : > { %v317_v1 = vld [vmem:[%s168_s26] ss:$0 sm:$0xff]  ;;  %s218_s8 = sshll.u32 %s192_s6, 4  ;;  %v194_v2 = vmul.f32 5.656854, %v193_v0  ;;  %s216_s16 = scalar_lea.hbm %s708_s2, %s319_s14  ;;  %s219_s8 = int_to_ptr.vmem [resolvable:$true] %s218_s8 }
  0x52   : > { %s205_s17 = scalar_lea.sflag [#allocation4], %s657_s29  ;;  %s429_s19 = scalar_lea.vmem %s219_s8, 32 }
  0x53   : > { %v202_v3 = vadd.f32 %v317_v1, %v194_v2  ;;  %p430_p6 = scmp.ne.s32.totalorder %s219_s8, %s429_s19  ;;  %p721_p13 = scmp.ne.s32.totalorder %s713_s21, 0 }
  0x54   : > { %s501_s20 = smov [#allocation7]  }
  0x55   : > { %203 = vst [vmem:[%s192_s6] sm:$0x3] %v202_v3  ;;  %p431_p7 = pnand %p430_p6, %p721_p13  ;;  %s433_s24 = sshll.u32 %s501_s20, 4  ;;  %s434_s24 = int_to_ptr.vmem [resolvable:$false] %s433_s24 }
  0x56   : > { %s435_s23 = scalar_lea.vmem %s434_s24, 64  ;;  %p436_p10 = scmp.lt.s32.totalorder %s219_s8, %s434_s24 }
  0x57   : > { %p432_p8 = pneg %p431_p7  ;;  %p437_p2 = scmp.lt.s32.totalorder %s435_s23, %s429_s19 }
  0x59   : > { %p438_p4 = por %p437_p2, %p436_p10 }
  0x5b   : > { %p439_p5 = pnand %p438_p4, %p432_p8 }
  0x5d   : > { %442 = shalt.err (!%p439_p5)
}
  0x5e   : > { %s443_s13 = scalar_lea.hbm %s216_s16, 32  ;;  %s447_s29 = scalar_lea.hbm %s708_s2, 64 }
  0x5f   : > { %p444_p9 = scmp.ne.s32.totalorder %s216_s16, %s443_s13  ;;  %p448_p12 = scmp.lt.s32.totalorder %s216_s16, %s708_s2 }
  0x60   : > { %p449_p1 = scmp.lt.s32.totalorder %s447_s29, %s443_s13 }
  0x61   : > { %p445_p0 = pnand %p444_p9, %p721_p13 }
  0x62   : > { %p450_p3 = por %p449_p1, %p448_p12 }
  0x63   : > { %p446_p11 = pneg %p445_p0 }
  0x65   : > { %p451_p6 = pnand %p450_p3, %p446_p11 }
  0x67   : > { %454 = shalt.err (!%p451_p6)
}
  0x68   : > { %326 = dma.vmem_to_hbm [thread:$0]  (%p721_p13), %s219_s8, 32, %s216_s16, %s205_s17  }
  0x69 PF: > { %s230_s28 = sand.u32 1, %s485_s9   ;;  %p722_p7 = scmp.ne.s32.totalorder %s714_s22, 0 }
  0x6a   : > { %p723_p8 = scmp.ge.s32.totalorder %s497_s12, 2  ;;  %s231_s3 = scalar_lea.sflag [#allocation4], %s230_s28 }
  0x6c   : > { %p336_p10 = pnand %p723_p8, %p722_p7 }
  0x6e   : > { %p337_p2 = pneg %p336_p10 }
  0x70   : > { %480 = dma.done.wait (%p337_p2), %s231_s3, 32  }
  0x71   : > { %482 = vsyncadd (%p337_p2), %s231_s3, 4294967264  ;;  %p18_p4 = scmp.ge.s32.totalorder %s542_s15, 4   ;;  %s724_s9 = smov %s489_s10 }
  0x72   : > { %s725_s10 = smov %s493_s11  ;;  %s726_s11 = smov %s554_s18 }
  0x73   : > { %s727_s12 = smov %s542_s15  ;;  %20 = sbr.rel (!%p18_p4) target bundleno = 7 (0x7), region = 86 }
  0x78   :  { %236 = vsyncpa [#allocation3], 1 }
  0x79   :  { %238 = vsyncpa [#allocation3 + $0x1], 1 }
  0x7a   :  { %239 = vsyncpa [#allocation6], 1 }
  0x7b   :  { %241 = vsyncpa [#allocation6 + $0x1], 1 }
  0x7c   :  { %242 = vsyncpa [#allocation4], 1 }
  0x7d   :  { %244 = vsyncpa [#allocation4 + $0x1], 1 }

</bundles_post_ra>
